<compile_context>
chip_gen: v5e
topology: v5e:2x2
jax: 0.10.0
libtpu: 0.0.40
codegen_flags: <defaults>
</compile_context>

<pallas_src>
import jax
import jax.numpy as jnp
from jax.experimental import pallas as pl
from jax.experimental.pallas import tpu as pltpu


def ste_choice_weights(logits, hard=True):
    """ChoiceLayerSTE forward blend weights.

    TODO(synk): layers.ChoiceLayerSTE source not provided; assuming the standard
    straight-through choice layer whose *forward value* is the hard one-hot of
    argmax(logits) (gradient would flow through softmax).  Set hard=False for a
    softmax-weighted blend instead.
    """
    if hard:
        return jax.nn.one_hot(jnp.argmax(logits), 2, dtype=jnp.float32)
    return jax.nn.softmax(logits.astype(jnp.float32))


def sparse_composed_kernel(scal_ref, wp_ref, wl_ref, xT_ref, o_ref):
    """Fused SparseComposedModel forward on one (D, TB) batch tile.

    scal_ref: (10,) f32 SMEM  = [b_lin, wp2, w2, b2, c0, c1, d0, d1, e0, e1]
    wp_ref  : (D, 1) f32 VMEM   PowerActivation exponents (resident across tiles)
    wl_ref  : (D, 1) f32 VMEM   Linear(D->1) weight       (resident across tiles)
    xT_ref  : (D, TB) bf16/f32  input, batch on the lane axis
    o_ref   : (1, TB) f32       lane-dense output slab
    """
    xT = xT_ref[...].astype(jnp.float32)            # (D, TB); f32 compute (v5e-safe)
    wp = wp_ref[...]                                # (D, 1)
    wl = wl_ref[...]                                # (D, 1)

    # PowerActivation: prod_i x_i^{w_i} = exp(sum_i w_i * log(x_i)), x > 0 assumed.
    log_x = jnp.log(xT)                                             # EUP, lane-dense
    s_pow = jnp.sum(wp * log_x, axis=0, keepdims=True)              # (1, TB) sublane reduce
    power_out = jnp.exp(s_pow)                                      # (1, TB)

    # Linear(D -> 1): sum_i w_i * x_i + b
    linear_out = jnp.sum(wl * xT, axis=0, keepdims=True) + scal_ref[0]   # (1, TB)

    # ChoiceLayerSTE blends (weights precomputed in the wrapper: hard one-hot STE forward).
    u_c = scal_ref[4] * power_out + scal_ref[5] * linear_out        # input to PowerActivation(1)
    u_d = scal_ref[6] * power_out + scal_ref[7] * linear_out        # input to Linear(1->1)

    # PowerActivation(1): u_c^{wp2}  (u_c > 0 by construction: abs() linear params, x > 0)
    y3 = jnp.exp(scal_ref[1] * jnp.log(u_c))
    # Linear(1 -> 1): w2 * u_d + b2
    y4 = scal_ref[2] * u_d + scal_ref[3]

    o_ref[...] = (scal_ref[8] * y3 + scal_ref[9] * y4).astype(o_ref.dtype)


def sparse_composed_forward(x, power_exp, lin_w, lin_b, power2_exp, lin2_w, lin2_b,
                            logits_c, logits_d, logits_e, *, tb=512, hard_switch=True):
    """Wrapper: layout plumbing + pallas_call.  x: (B, D), any float dtype (bf16 preferred)."""
    B, D = x.shape
    assert tb > 0 and tb % 128 == 0, "batch tile must be a multiple of the 128-lane width"

    c = ste_choice_weights(logits_c, hard_switch)
    d = ste_choice_weights(logits_d, hard_switch)
    e = ste_choice_weights(logits_e, hard_switch)
    # SMEM scalar vector: [b_lin, wp2, w2, b2, c0, c1, d0, d1, e0, e1]
    scal = jnp.concatenate([
        lin_b.reshape(1), power2_exp.reshape(1),
        lin2_w.reshape(1), lin2_b.reshape(1), c, d, e,
    ]).astype(jnp.float32)

    # Batch on the lane axis: transpose to (D, B) and pad B up to a tile multiple.
    # Pad with 1.0 so log() in the dead lanes stays finite (padding is sliced off below).
    B_pad = ((B + tb - 1) // tb) * tb
    xT = jnp.ones((D, B_pad), x.dtype).at[:, :B].set(x.T)
    wp_col = power_exp.reshape(D, 1).astype(jnp.float32)
    wl_col = lin_w.reshape(D, 1).astype(jnp.float32)

    num_tiles = B_pad // tb
    out = pl.pallas_call(
        sparse_composed_kernel,
        out_shape=jax.ShapeDtypeStruct((1, B_pad), jnp.float32),
        grid=(num_tiles,),
        in_specs=[
            pl.BlockSpec(memory_space=pltpu.MemorySpace.SMEM),   # (10,) scalar params
            pl.BlockSpec((D, 1), lambda i: (0, 0)),              # power exponents (resident)
            pl.BlockSpec((D, 1), lambda i: (0, 0)),              # linear weight (resident)
            pl.BlockSpec((D, tb), lambda i: (0, i)),             # x tile (batch on lanes)
        ],
        out_specs=pl.BlockSpec((1, tb), lambda i: (0, i)),       # lane-dense output slab
        compiler_params=pltpu.CompilerParams(
            dimension_semantics=("parallel",),                   # megacore / v7x 2-TC sharding
            vmem_limit_bytes=32 * 1024 * 1024,                   # safe on v5e/v6e/v7x
        ),
    )(scal, wp_col, wl_col, xT)

    return out[:, :B].reshape(B, 1)                              # module output shape (B, 1)


def reference_forward(x, power_exp, lin_w, lin_b, power2_exp, lin2_w, lin2_b,
                      logits_c, logits_d, logits_e, hard_switch=True):
    """Pure-JAX reference mirroring the PyTorch forward (same STE assumptions)."""
    power_out = jnp.prod(x ** power_exp[None, :], axis=-1, keepdims=True)       # (B, 1)
    linear_out = x @ lin_w.reshape(-1, 1) + lin_b.reshape(1, 1)                 # (B, 1)
    c = ste_choice_weights(logits_c, hard_switch)
    d = ste_choice_weights(logits_d, hard_switch)
    e = ste_choice_weights(logits_e, hard_switch)
    u_c = c[0] * power_out + c[1] * linear_out
    u_d = d[0] * power_out + d[1] * linear_out
    y3 = u_c ** power2_exp.reshape(1, 1)
    y4 = u_d * lin2_w.reshape(1, 1) + lin2_b.reshape(1, 1)
    return e[0] * y3 + e[1] * y4


if __name__ == "__main__":
    key = jax.random.PRNGKey(0)
    keys = jax.random.split(key, 7)

    B, D = 500, 16   # batch, input_dim (B is deliberately not a tile multiple -> exercises padding)

    # Positive inputs so x^w (= exp(w*log x)) is well defined, matching the module's domain.
    x_f32 = jax.random.uniform(keys[0], (B, D), jnp.float32, minval=0.5, maxval=2.0)
    x = x_f32.astype(jnp.bfloat16)   # bf16 at the kernel boundary (mem-bound kernel)

    # Parameter init mirroring __init__ shapes (layers.PowerActivation init distribution
    # unknown -> exponents near 1; nn.Linear weights/biases passed through abs()).
    power_exp = 1.0 + 0.1 * jax.random.normal(keys[1], (D,), jnp.float32)
    lin_w = jnp.abs(0.1 * jax.random.normal(keys[2], (1, D), jnp.float32))       # .abs_()
    lin_b = jnp.abs(0.1 * jax.random.normal(keys[3], (1,), jnp.float32))         # .abs_()
    power2_exp = 1.0 + 0.1 * jax.random.normal(keys[4], (1,), jnp.float32)
    lin2_w = jnp.abs(1.0 + 0.1 * jax.random.normal(keys[5], (1, 1), jnp.float32))  # .abs_()
    lin2_b = jnp.abs(0.1 * jax.random.normal(keys[6], (1,), jnp.float32))          # .abs_()
    logits_c = jnp.array([0.0, 3.0], jnp.float32)   # as set in __init__
    logits_d = jnp.array([3.0, 0.0], jnp.float32)
    logits_e = jnp.array([1.0, 1.0], jnp.float32)

    out = sparse_composed_forward(x, power_exp, lin_w, lin_b, power2_exp, lin2_w, lin2_b,
                                  logits_c, logits_d, logits_e, tb=128)
    out = jax.block_until_ready(out)

    # Reference uses the same bf16-rounded inputs the kernel saw, computed in f32.
    ref = reference_forward(x.astype(jnp.float32), power_exp, lin_w, lin_b, power2_exp,
                            lin2_w, lin2_b, logits_c, logits_d, logits_e)

    assert out.shape == (B, 1)
    max_err = float(jnp.max(jnp.abs(out - ref)))
    assert jnp.allclose(out, ref, atol=2e-3, rtol=2e-3), f"max abs err = {max_err}"

    print("KERNEL_OK")
</pallas_src>

<mosaic_0001>
module attributes {stable_mosaic.version = 11 : i64} {
  func.func @sparse_composed_kernel(%arg0: i32, %arg1: memref<10xf32, #tpu.memory_space<smem>>, %arg2: memref<16x1xf32, #tpu.memory_space<vmem>>, %arg3: memref<16x1xf32, #tpu.memory_space<vmem>>, %arg4: memref<16x128xbf16, #tpu.memory_space<vmem>>, %arg5: memref<1x128xf32, #tpu.memory_space<vmem>>) attributes {dimension_semantics = [#tpu.dimension_semantics<parallel>], iteration_bounds = array<i64: 4>, scalar_prefetch = 0 : i64, scratch_operands = 0 : i64, tpu.core_type = #tpu.core_type<tc>, window_params = [{transform_indices = @transform_0, window_bounds = array<i64: 10>}, {pipeline_mode = #tpu.pipeline_mode<synchronous>, transform_indices = @transform_1, window_bounds = array<i64: 16, 1>}, {pipeline_mode = #tpu.pipeline_mode<synchronous>, transform_indices = @transform_2, window_bounds = array<i64: 16, 1>}, {transform_indices = @transform_3, window_bounds = array<i64: 16, 128>}, {transform_indices = @transform_4, window_bounds = array<i64: 1, 128>}]} {
    %c0 = arith.constant 0 : index
    %c0_0 = arith.constant 0 : index
    %0 = vector.load %arg4[%c0, %c0_0] : memref<16x128xbf16, #tpu.memory_space<vmem>>, vector<16x128xbf16>
    %1 = arith.extf %0 : vector<16x128xbf16> to vector<16x128xf32>
    %c0_1 = arith.constant 0 : index
    %c0_2 = arith.constant 0 : index
    %2 = vector.load %arg2[%c0_1, %c0_2] : memref<16x1xf32, #tpu.memory_space<vmem>>, vector<16x1xf32>
    %c0_3 = arith.constant 0 : index
    %c0_4 = arith.constant 0 : index
    %3 = vector.load %arg3[%c0_3, %c0_4] : memref<16x1xf32, #tpu.memory_space<vmem>>, vector<16x1xf32>
    %4 = math.log %1 : vector<16x128xf32>
    %5 = vector.broadcast %2 : vector<16x1xf32> to vector<16x128xf32>
    %6 = arith.mulf %5, %4 : vector<16x128xf32>
    %cst = arith.constant dense<0.000000e+00> : vector<128xf32>
    %7 = vector.multi_reduction <add>, %6, %cst [0] : vector<16x128xf32> to vector<128xf32>
    %8 = vector.shape_cast %7 : vector<128xf32> to vector<1x128xf32>
    %9 = math.exp %8 : vector<1x128xf32>
    %10 = vector.broadcast %3 : vector<16x1xf32> to vector<16x128xf32>
    %11 = arith.mulf %10, %1 : vector<16x128xf32>
    %cst_5 = arith.constant dense<0.000000e+00> : vector<128xf32>
    %12 = vector.multi_reduction <add>, %11, %cst_5 [0] : vector<16x128xf32> to vector<128xf32>
    %13 = vector.shape_cast %12 : vector<128xf32> to vector<1x128xf32>
    %c0_6 = arith.constant 0 : index
    %14 = memref.load %arg1[%c0_6] : memref<10xf32, #tpu.memory_space<smem>>
    %15 = vector.broadcast %14 : f32 to vector<1x128xf32>
    %16 = arith.addf %13, %15 : vector<1x128xf32>
    %c4 = arith.constant 4 : index
    %17 = memref.load %arg1[%c4] : memref<10xf32, #tpu.memory_space<smem>>
    %18 = vector.broadcast %17 : f32 to vector<1x128xf32>
    %19 = arith.mulf %18, %9 : vector<1x128xf32>
    %c5 = arith.constant 5 : index
    %20 = memref.load %arg1[%c5] : memref<10xf32, #tpu.memory_space<smem>>
    %21 = vector.broadcast %20 : f32 to vector<1x128xf32>
    %22 = arith.mulf %21, %16 : vector<1x128xf32>
    %23 = arith.addf %19, %22 : vector<1x128xf32>
    %c6 = arith.constant 6 : index
    %24 = memref.load %arg1[%c6] : memref<10xf32, #tpu.memory_space<smem>>
    %25 = vector.broadcast %24 : f32 to vector<1x128xf32>
    %26 = arith.mulf %25, %9 : vector<1x128xf32>
    %c7 = arith.constant 7 : index
    %27 = memref.load %arg1[%c7] : memref<10xf32, #tpu.memory_space<smem>>
    %28 = vector.broadcast %27 : f32 to vector<1x128xf32>
    %29 = arith.mulf %28, %16 : vector<1x128xf32>
    %30 = arith.addf %26, %29 : vector<1x128xf32>
    %c1 = arith.constant 1 : index
    %31 = memref.load %arg1[%c1] : memref<10xf32, #tpu.memory_space<smem>>
    %32 = math.log %23 : vector<1x128xf32>
    %33 = vector.broadcast %31 : f32 to vector<1x128xf32>
    %34 = arith.mulf %33, %32 : vector<1x128xf32>
    %35 = math.exp %34 : vector<1x128xf32>
    %c2 = arith.constant 2 : index
    %36 = memref.load %arg1[%c2] : memref<10xf32, #tpu.memory_space<smem>>
    %37 = vector.broadcast %36 : f32 to vector<1x128xf32>
    %38 = arith.mulf %37, %30 : vector<1x128xf32>
    %c3 = arith.constant 3 : index
    %39 = memref.load %arg1[%c3] : memref<10xf32, #tpu.memory_space<smem>>
    %40 = vector.broadcast %39 : f32 to vector<1x128xf32>
    %41 = arith.addf %38, %40 : vector<1x128xf32>
    %c8 = arith.constant 8 : index
    %42 = memref.load %arg1[%c8] : memref<10xf32, #tpu.memory_space<smem>>
    %43 = vector.broadcast %42 : f32 to vector<1x128xf32>
    %44 = arith.mulf %43, %35 : vector<1x128xf32>
    %c9 = arith.constant 9 : index
    %45 = memref.load %arg1[%c9] : memref<10xf32, #tpu.memory_space<smem>>
    %46 = vector.broadcast %45 : f32 to vector<1x128xf32>
    %47 = arith.mulf %46, %41 : vector<1x128xf32>
    %48 = arith.addf %44, %47 : vector<1x128xf32>
    %c0_7 = arith.constant 0 : index
    %c0_8 = arith.constant 0 : index
    %49 = vector.load %arg5[%c0_7, %c0_8] : memref<1x128xf32, #tpu.memory_space<vmem>>, vector<1x128xf32>
    tpu.vector_store %arg5[%c0_7, %c0_8], %48 {strides = array<i32>} : memref<1x128xf32, #tpu.memory_space<vmem>>, vector<1x128xf32>,
    return
  }
  func.func @transform_0(%arg0: i32) -> i32 {
    %c0_i32 = arith.constant 0 : i32
    %c0_i32_0 = arith.constant 0 : i32
    return %c0_i32 : i32
  }
  func.func @transform_1(%arg0: i32) -> (i32, i32) {
    %c0_i32 = arith.constant 0 : i32
    %c0_i32_0 = arith.constant 0 : i32
    %c0_i32_1 = arith.constant 0 : i32
    return %c0_i32, %c0_i32_0 : i32, i32
  }
  func.func @transform_2(%arg0: i32) -> (i32, i32) {
    %c0_i32 = arith.constant 0 : i32
    %c0_i32_0 = arith.constant 0 : i32
    %c0_i32_1 = arith.constant 0 : i32
    return %c0_i32, %c0_i32_0 : i32, i32
  }
  func.func @transform_3(%arg0: i32) -> (i32, i32) {
    %c0_i32 = arith.constant 0 : i32
    %c0_i32_0 = arith.constant 0 : i32
    return %c0_i32, %arg0 : i32, i32
  }
  func.func @transform_4(%arg0: i32) -> (i32, i32) {
    %c0_i32 = arith.constant 0 : i32
    %c0_i32_0 = arith.constant 0 : i32
    return %c0_i32, %arg0 : i32, i32
  }
}

</mosaic_0001>

<bundles_post_ra>
// kernel: tpu_custom_call.1
= control target key start
LH: loop header
LB: loop body
LE: loop exit
PB: predicated region body
PF: predicated region fallthrough
CT: control target
= control target key end

     0   :  { %9 = vsyncpa [#allocation4], 0  ;;  %s757_s0 = inlined_call_operand.vmem [shape: f32[10], index: 0, kind: input, shape index: {}]   ;;  %s758_s1 = inlined_call_operand.vmem [shape: f32[16,1], index: 1, kind: input, shape index: {}]   ;;  %s759_s2 = inlined_call_operand.vmem [shape: f32[16,1], index: 2, kind: input, shape index: {}]   ;;  %s760_s3 = inlined_call_operand.vmem [shape: bf16[16,512], index: 3, kind: input, shape index: {}]   ;;  %s761_s4 = inlined_call_operand.hbm [shape: f32[1,512], index: 4, kind: output, shape index: {}]  }
   0x1   :  { %10 = vsyncpa [#allocation3], 0 }
   0x2   :  { %12 = vsyncpa [#allocation3 + $0x1], 0  ;;  %s629_s15 = smov 0   ;;  %s631_s16 = smov 0  }
   0x3   :  { %s633_s17 = smov 0   ;;  %s635_s18 = smov 0  }
   0x4 LB: > { %s650_s19 = sadd.s32 4294967295, %s600_s18   ;;  %s432_s20 = sadd.s32 4294967294, %s600_s18   ;;  %s600_s18 = sphi %s635_s18, %s769_s18   ;;  %s596_s17 = sphi %s633_s17, %s768_s17   ;;  %s592_s16 = sphi %s631_s16, %s767_s16   ;;  %s588_s15 = sphi %s629_s15, %s766_s15  }
   0x5   : > { %s654_s21 = sadd.s32 1, %s600_s18   ;;  %s88_s22 = sadd.s32 1, %s596_s17 }
   0x6   : > { %s85_s23 = ssub.s32 %s600_s18, %s654_s21  ;;  %p95_p0 = scmp.ne.s32.totalorder %s596_s17, %s592_s16 }
   0x7   : > { %p86_p1 = scmp.eq.s32.totalorder %s85_s23, 0  ;;  %p96_p2 = scmp.eq.s32.totalorder %s600_s18, 0 }
   0x8   : > { %p125_p3 = scmp.eq.s32.totalorder %s650_s19, 3  ;;  %p130_p4 = scmp.ne.s32.totalorder %s592_s16, %s588_s15 }
   0x9   : > { %s666_s24 = scalar_select %p86_p1, %s596_s17, %s88_s22  }
   0xa   : > { %p668_p5 = por %p96_p2, %p95_p0  ;;  %p672_p6 = por %p125_p3, %p95_p0 }
   0xb   : > { %p131_p7 = scmp.eq.s32.totalorder %s432_s20, 3  ;;  %p433_p8 = scmp.ge.s32.totalorder %s600_s18, 1 }
   0xc   : > { %p138_p9 = scmp.lt.s32.totalorder %s600_s18, 5  ;;  %p470_p11 = scmp.eq.s32.totalorder %s650_s19, 0 }
   0xd   : > { %p678_p10 = por %p131_p7, %p130_p4  ;;  %s150_s5 = sshll.u32 %s757_s0, 4  ;;  %s151_s5 = int_to_ptr.vmem [resolvable:$true] %s150_s5 }
   0xe   : > { %p683_p12 = pnand %p433_p8, %p138_p9  ;;  %s602_s6 = smov [#allocation2]  }
   0xf   : > { %p435_p1 = scmp.ge.s32.totalorder %s600_s18, 4 }
  0x10   : > { %p462_p13 = pneg %p683_p12 }
  0x11   : > { %163 = sbr.rel (%p435_p1) target bundleno = 28 (0x1c), region = 28 }
  0x12   : > { %p463_p0 = pnand %p470_p11, %p462_p13 }
  0x14   : > { %465 = dma.vmem_to_smem (!%p463_p0), %s151_s5, 16, %s602_s6, [#allocation4]  }
  0x16   : > { %166 = sbr.rel (!%p668_p5) target bundleno = 28 (0x1c), region = 32  ;;  %s168_s7 = sand.u32 (%p668_p5), 1, %s596_s17  }
  0x17   : > { %s437_s8 = sshll.u32 (%p668_p5), %s600_s18, 2  ;;  %s436_s9 = sshll.u32 (%p668_p5), %s168_s7, 3 }
  0x18   : > { %s172_s12 = scalar_lea.vmem (%p668_p5), %s760_s3, %s437_s8  ;;  %s170_s13 = scalar_lea.vmem (%p668_p5), [#allocation5], %s436_s9 }
  0x19   : > { %v189_v0 = vld [vmem:[%s172_s12] sm:$0xf] (%p668_p5)  ;;  %v191_v1 = vld [vmem:[%s172_s12 + $0x10] sm:$0xf] (%p668_p5) }
  0x1a   : > { %190 = vst [vmem:[%s170_s13] sm:$0xf] (%p668_p5), %v189_v0 }
  0x1b   : > { %192 = vst [vmem:[%s170_s13 + $0x4] sm:$0xf] %v191_v1 }
  0x1c PF: > { %223 = sbr.rel (%p683_p12) target bundleno = 219 (0xdb), region = 73 }
  0x21   : > { %579 = dma.done.wait (%p470_p11), [#allocation4], 16  }
  0x22   : > { %581 = vsyncadd (%p470_p11), [#allocation4], 4294967280  ;;  %s709_s14 = sand.u32 1, %s592_s16  }
  0x23   : > { %s440_s20 = sshll.u32 %s709_s14, 3 }
  0x24   : > { %s233_s22 = scalar_lea.vmem [#allocation5], %s440_s20 }
  0x25   : > { %237 = sfence }
  0x26   : > { %v262_v2 = vld [vmem:[%s759_s2] sm:$0xff]  ;;  %v603_v4 = vmov 0   ;;  %v263_v5 = vld [vmem:[%s759_s2 + $0x8] sm:$0xff]  ;;  %s308_s8 = sld [smem:[#allocation2]]  ;;  %s355_s30 = scalar_lea.hbm %s761_s4, %s650_s19 }
  0x27   : > { %v260_v3 = vld [vmem:[%s758_s1] sm:$0xff]  ;;  %508 = vset.pattern.permute.xlu1 %v603_v4  ;;  %507 = vset.pattern.permute.xlu0 %v603_v4  ;;  %v261_v6 = vld [vmem:[%s758_s1 + $0x8] sm:$0xff]  ;;  %s442_s9 = sld [smem:[#allocation2 + $0x5]]  ;;  %s255_s5 = scalar_lea.vmem [#allocation6], %s709_s14 }
  0x28   : > { %291 = vperm.xlu1 %508, %v262_v2   ;;  %270 = vperm.xlu0 %507, %v260_v3   ;;  %v453_v7 = vld [vmem:[%s233_s22] sm:$0xff]   ;;  %s441_s10 = sld [smem:[#allocation2 + $0x4]]  ;;  %s357_s6 = sshll.u32 %s255_s5, 4  ;;  %s358_s6 = int_to_ptr.vmem [resolvable:$true] %s357_s6 }
  0x29   : > { %v454_v8 = vunpack.c.l.bf16 %v453_v7  ;;  %v455_v9 = vunpack.c.h.bf16 %v453_v7  ;;  %s443_s11 = sld [smem:[#allocation2 + $0x6]]  ;;  %s359_s7 = sshll.u32 %s355_s30, 4  ;;  %s360_s7 = int_to_ptr.hbm [resolvable:$true] %s359_s7 }
  0x2a   : > { %s444_s12 = sld [smem:[#allocation2 + $0x7]] }
  0x2b   : > { %509 = vlog2.f32 %v454_v8  ;;  %s445_s13 = sld [smem:[#allocation2 + $0x1]] }
  0x2c   : > { %511 = vlog2.f32 %v455_v9  ;;  %v309_v37 = vstv %s308_s8  ;;  %s446_s20 = sld [smem:[#allocation2 + $0x2]]  ;;  %s347_s8 = scalar_lea.sflag [#allocation3], %s709_s14 }
  0x2d   : > { %v315_v39 = vstv %s442_s9  ;;  %s447_s22 = sld [smem:[#allocation2 + $0x3]]  ;;  %s548_s9 = sshra.s32 %s360_s7, 4  ;;  %s549_s9 = int_to_ptr.hbm [resolvable:$true] %s548_s9 }
  0x2e   : > { %v312_v40 = vstv %s441_s10  ;;  %s449_s23 = sld [smem:[#allocation2 + $0x9]]  ;;  %s550_s10 = scalar_lea.hbm %s549_s9, 1 }
  0x2f   : > { %v319_v45 = vstv %s443_s11  ;;  %s448_s25 = sld [smem:[#allocation2 + $0x8]]  ;;  %p551_p2 = scmp.ne.s32.totalorder %s549_s9, %s550_s10 }
  0x30   : > { %296 = vperm.xlu1 %508, %v263_v5   ;;  %275 = vperm.xlu0 %507, %v261_v6   ;;  %v322_v46 = vstv %s444_s12  ;;  %s554_s12 = scalar_lea.hbm %s761_s4, 4  ;;  %p555_p5 = scmp.lt.s32.totalorder %s549_s9, %s761_s4 }
  0x31   : > { %v510_v12 = vpop.eup %509  ;;  %v328_v50 = vstv %s445_s13  ;;  %p552_p3 = pnand %p551_p2, %p672_p6  ;;  %p556_p7 = scmp.lt.s32.totalorder %s554_s12, %s550_s10 }
  0x32   : > { %v512_v13 = vpop.eup %511  ;;  %v265_v14 = vmul.f32 0.6931472, %v510_v12  ;;  %v333_v54 = vstv %s446_s20 }
  0x33   : > { %v267_v15 = vmul.f32 0.6931472, %v512_v13  ;;  %v336_v57 = vstv %s447_s22  ;;  %p553_p4 = pneg %p552_p3  ;;  %p557_p8 = por %p556_p7, %p555_p5 }
  0x34   : > { %v342_v60 = vstv %s449_s23 }
  0x35   : > { %v339_v59 = vstv %s448_s25  ;;  %p558_p9 = pnand %p557_p8, %p553_p4 }
  0x9a   : > { %v292_v10 = vpop.permute.xlu1 %291  ;;  %v271_v11 = vpop.permute.xlu0 %270 }
  0x9b   : > { %v299_v16 = vmul.f32 %v454_v8, %v292_v10  ;;  %v278_v19 = vmul.f32 %v271_v11, %v265_v14 }
  0xa2   : > { %v297_v17 = vpop.permute.xlu1 %296  ;;  %v276_v18 = vpop.permute.xlu0 %275 }
  0xa3   : > { %v300_v20 = vmul.f32 %v455_v9, %v297_v17  ;;  %v279_v21 = vmul.f32 %v276_v18, %v267_v15 }
  0xa5   : > { %v301_v22 = vadd.f32 %v300_v20, %v299_v16  ;;  %v280_v23 = vadd.f32 %v279_v21, %v278_v19 }
  0xa7   : > { %v302_v24 = vrot.slane %v301_v22, 4  ;;  %v281_v25 = vrot.slane %v280_v23, 4 }
  0xa9   : > { %v303_v26 = vadd.f32 %v302_v24, %v301_v22  ;;  %v282_v27 = vadd.f32 %v281_v25, %v280_v23 }
  0xab   : > { %v304_v28 = vrot.slane %v303_v26, 2  ;;  %v283_v29 = vrot.slane %v282_v27, 2 }
  0xad   : > { %v305_v30 = vadd.f32 %v304_v28, %v303_v26  ;;  %v284_v31 = vadd.f32 %v283_v29, %v282_v27 }
  0xaf   : > { %v285_v32 = vrot.slane %v284_v31, 1  ;;  %v306_v33 = vrot.slane %v305_v30, 1 }
  0xb1   : > { %v286_v34 = vadd.f32 %v285_v32, %v284_v31  ;;  %v307_v36 = vadd.f32 %v306_v33, %v305_v30 }
  0xb3   : > { %v287_v35 = vmul.f32 1.442695, %v286_v34  ;;  %v310_v38 = vadd.f32 %v309_v37, %v307_v36 }
  0xb5   : > { %513 = vpow2.f32 %v287_v35  ;;  %v316_v42 = vmul.f32 %v315_v39, %v310_v38  ;;  %v323_v49 = vmul.f32 %v322_v46, %v310_v38 }
  0xbb   : > { %v514_v41 = vpop.eup %513 }
  0xbc   : > { %v313_v43 = vmul.f32 %v514_v41, %v312_v40  ;;  %v320_v47 = vmul.f32 %v514_v41, %v319_v45 }
  0xbe   : > { %v317_v44 = vadd.f32 %v316_v42, %v313_v43  ;;  %v324_v52 = vadd.f32 %v323_v49, %v320_v47 }
  0xc0   : > { %515 = vlog2.f32 %v317_v44  ;;  %v334_v56 = vmul.f32 %v333_v54, %v324_v52 }
  0xc2   : > { %v337_v58 = vadd.f32 %v336_v57, %v334_v56 }
  0xc4   : > { %v343_v63 = vmul.f32 %v342_v60, %v337_v58 }
  0xc6   : > { %v516_v48 = vpop.eup %515 }
  0xc7   : > { %v327_v51 = vmul.f32 0.6931472, %v516_v48 }
  0xc9   : > { %v329_v53 = vmul.f32 %v328_v50, %v327_v51 }
  0xcb   : > { %v330_v55 = vmul.f32 1.442695, %v329_v53 }
  0xcd   : > { %517 = vpow2.f32 %v330_v55 }
  0xd3   : > { %v518_v61 = vpop.eup %517 }
  0xd4   : > { %v340_v62 = vmul.f32 %v518_v61, %v339_v59 }
  0xd6   : > { %v344_v0 = vadd.f32 %v343_v63, %v340_v62 }
  0xd8   : > { %345 = vst [vmem:[%s255_s5] sm:$0x1] %v344_v0 }
  0xd9   : > { %561 = shalt.err (!%p558_p9)
}
  0xda   : > { %460 = dma.vmem_to_hbm [thread:$0]  (%p672_p6), %s358_s6, 16, %s360_s7, %s347_s8  }
  0xdb PF: > { %p472_p11 = scmp.ge.s32.totalorder %s600_s18, 2  ;;  %s371_s14 = sand.u32 1, %s588_s15  }
  0xdc   : > { %s372_s22 = scalar_lea.sflag [#allocation3], %s371_s14 }
  0xdd   : > { %p467_p12 = pnand %p472_p11, %p678_p10 }
  0xdf   : > { %p468_p13 = pneg %p467_p12 }
  0xe1   : > { %583 = dma.done.wait (%p468_p13), %s372_s22, 16  }
  0xe2   : > { %585 = vsyncadd (%p468_p13), %s372_s22, 4294967280  ;;  %p15_p0 = scmp.ge.s32.totalorder %s654_s21, 6   ;;  %s766_s15 = smov %s592_s16 }
  0xe3   : > { %s767_s16 = smov %s596_s17  ;;  %s768_s17 = smov %s666_s24 }
  0xe4   : > { %s769_s18 = smov %s654_s21  ;;  %17 = sbr.rel (!%p15_p0) target bundleno = 4 (0x4), region = 122 }
  0xe9   :  { %377 = vsyncpa [#allocation3], 1 }
  0xea   :  { %379 = vsyncpa [#allocation3 + $0x1], 1 }
  0xeb   :  { %380 = vsyncpa [#allocation4], 1 }
  0xec   :  { %382 = vsyncpa [#allocation4 + $0x1], 1 }

</bundles_post_ra>
